<compile_context>
chip_gen: v7x
topology: tpu7x:2x2x1
jax: 0.10.0
libtpu: 0.0.40
codegen_flags: <defaults>
</compile_context>

<pallas_src>
import jax
import jax.numpy as jnp
from jax import lax
from jax.experimental import pallas as pl
from jax.experimental.pallas import tpu as pltpu

_LANES = 128
_SUBLANES = 8


def _device_kind() -> str:
    try:
        return jax.devices()[0].device_kind.lower()
    except Exception:  # pragma: no cover - defensive; default path is fine.
        return ""


def _make_disp_loss_kernel(rows, n_blocks, block_rows, acc_rows, steps, ragged):
    """Build the kernel with all shape parameters baked in statically."""

    def kernel(img_ref, gt_ref, out_ref, acc_ref):
        p = pl.program_id(0)  # TensorCore slice (size 1 on v5e/v6e)
        j = pl.program_id(1)  # sequential reduction step within the slice

        @pl.when(j == 0)
        def _init():
            acc_ref[...] = jnp.zeros_like(acc_ref)

        diff = jnp.abs(
            img_ref[...].astype(jnp.float32) - gt_ref[...].astype(jnp.float32)
        )

        def _fold(d):
            # Fold (block_rows, 128) into the (acc_rows, 128) accumulator with
            # pure elementwise vreg adds; acc_rows = 64 keeps 8 independent
            # add chains in flight (no long serial VPU dependency).
            return d.reshape(block_rows // acc_rows, acc_rows, _LANES).sum(axis=0)

        if ragged:
            b = p * steps + j  # global block index along the row axis
            is_last = b == n_blocks - 1

            @pl.when(is_last)
            def _acc_masked():
                # Only the final block is partial: rows >= `rows` are Pallas
                # edge-padding garbage -> select them to zero (VPU only).
                row_ids = b * block_rows + lax.broadcasted_iota(
                    jnp.int32, (block_rows, _LANES), 0
                )
                acc_ref[...] += _fold(jnp.where(row_ids < rows, diff, 0.0))

            @pl.when(jnp.logical_not(is_last))
            def _acc_full():
                acc_ref[...] += _fold(diff)

        else:
            acc_ref[...] += _fold(diff)

        @pl.when(j == steps - 1)
        def _finalize():
            # Single cross-lane reduce + scalar SMEM store per grid slice.
            out_ref[0, 0] = jnp.sum(acc_ref[...])

    return kernel


def disp_loss(img: jax.Array, gt: jax.Array) -> jax.Array:
    """Scalar mean-absolute-error disparity loss, hot path in Pallas."""
    assert img.shape == gt.shape, "img and gt must have identical shapes"
    n_elem = img.size

    img_flat = img.reshape(-1)
    gt_flat = gt.reshape(-1)

    # Pad only up to the lane width (and at least one (8,128) tile for tiny
    # inputs).  Whenever n_elem % 128 == 0 this path is copy-free; the ragged
    # last *block* is masked inside the kernel instead of padding in HBM.
    padded = max(pl.cdiv(n_elem, _LANES) * _LANES, _SUBLANES * _LANES)
    pad = padded - n_elem
    if pad:
        # TODO(synk): lane-remainder case still incurs one HBM copy of the
        # inputs; could be removed by handling a 1-D tail inside the kernel.
        img_flat = jnp.pad(img_flat, (0, pad))
        gt_flat = jnp.pad(gt_flat, (0, pad))

    rows = padded // _LANES  # >= 8
    img2d = img_flat.reshape(rows, _LANES)
    gt2d = gt_flat.reshape(rows, _LANES)

    kind = _device_kind()
    # 2 MiB f32 blocks on v5e, 4 MiB on v6e/v7x (review: 4096-8192 rows).
    target_rows = 4096 if "v5" in kind else 8192
    block_rows = min(target_rows, rows - rows % _SUBLANES)  # multiple of 8
    n_blocks = pl.cdiv(rows, block_rows)
    ragged = (rows % block_rows) != 0

    # Two-slice split only on 2-TC chips (v7x) and only when it divides the
    # block count exactly -> no clamp, no per-step guard, no dummy DMA.
    n_parallel = 2 if ("v7" in kind and n_blocks >= 2 and n_blocks % 2 == 0) else 1
    steps = n_blocks // n_parallel

    # 8 interleaved accumulator row-groups when the block allows it.
    acc_rows = 8 * _SUBLANES if block_rows % (8 * _SUBLANES) == 0 else _SUBLANES

    kernel = _make_disp_loss_kernel(
        rows, n_blocks, block_rows, acc_rows, steps, ragged
    )

    def in_map(p, j):
        return (p * steps + j, 0)

    bytes_per_elem = img.dtype.itemsize + gt.dtype.itemsize
    cost = pl.CostEstimate(
        flops=3 * n_elem,
        transcendentals=0,
        bytes_accessed=n_elem * bytes_per_elem + 4 * n_parallel,
    )

    partials = pl.pallas_call(
        kernel,
        out_shape=jax.ShapeDtypeStruct((n_parallel, 1), jnp.float32),
        grid_spec=pltpu.PrefetchScalarGridSpec(
            num_scalar_prefetch=0,
            grid=(n_parallel, steps),
            in_specs=[
                pl.BlockSpec((block_rows, _LANES), in_map),
                pl.BlockSpec((block_rows, _LANES), in_map),
            ],
            out_specs=pl.BlockSpec(
                (1, 1), lambda p, j: (p, 0), memory_space=pltpu.SMEM
            ),
            scratch_shapes=[pltpu.VMEM((acc_rows, _LANES), jnp.float32)],
        ),
        compiler_params=pltpu.CompilerParams(
            dimension_semantics=("parallel", "arbitrary"),
            # 40 MiB covers 2 inputs x 2 pipeline buffers x 4 MiB plus f32
            # temporaries on every generation (v7x physical VMEM is 64 MiB).
            vmem_limit_bytes=40 * 1024 * 1024,
        ),
        cost_estimate=cost,
    )(img2d, gt2d)

    total = jnp.sum(partials)
    return (total / jnp.float32(n_elem)).astype(jnp.float32)


if __name__ == "__main__":
    key = jax.random.PRNGKey(0)
    k1, k2, k3, k4 = jax.random.split(key, 4)

    # Small NCHW disparity maps: batch=2, channels=4, spatial 16x16
    # (lane-aligned -> copy-free wrapper path).
    img = jax.random.normal(k1, (2, 4, 16, 16), dtype=jnp.float32)
    gt = jax.random.normal(k2, (2, 4, 16, 16), dtype=jnp.float32)
    loss = disp_loss(img, gt)
    jax.block_until_ready(loss)
    ref = jnp.mean(jnp.abs(img - gt))
    assert jnp.allclose(loss, ref, rtol=1e-6, atol=1e-6), (loss, ref)

    # Lane-unaligned, block-ragged shape exercising the in-kernel tail mask.
    img2 = jax.random.normal(k3, (3, 5, 7, 11), dtype=jnp.float32)
    gt2 = jax.random.normal(k4, (3, 5, 7, 11), dtype=jnp.float32)
    loss2 = disp_loss(img2, gt2)
    jax.block_until_ready(loss2)
    ref2 = jnp.mean(jnp.abs(img2 - gt2))
    assert jnp.allclose(loss2, ref2, rtol=1e-5, atol=1e-6), (loss2, ref2)

    print("KERNEL_OK")
</pallas_src>

<mosaic_0001>
module attributes {stable_mosaic.version = 11 : i64} {
  func.func @kernel(%arg0: i32, %arg1: i32, %arg2: memref<16x128xf32, #tpu.memory_space<vmem>>, %arg3: memref<16x128xf32, #tpu.memory_space<vmem>>, %arg4: memref<1x1xf32, #tpu.memory_space<smem>>, %arg5: memref<8x128xf32, #tpu.memory_space<vmem>>) attributes {dimension_semantics = [#tpu.dimension_semantics<parallel>, #tpu.dimension_semantics<arbitrary>], iteration_bounds = array<i64: 1, 1>, scalar_prefetch = 0 : i64, scratch_operands = 1 : i64, tpu.core_type = #tpu.core_type<tc>, window_params = [{transform_indices = @transform_0, window_bounds = array<i64: 16, 128>}, {transform_indices = @transform_1, window_bounds = array<i64: 16, 128>}, {transform_indices = @transform_2, window_bounds = array<i64: 1, 1>}]} {
    %c0_i32 = arith.constant 0 : i32
    %0 = arith.cmpi eq, %arg1, %c0_i32 : i32
    %1 = arith.extui %0 : i1 to i32
    %c0_i32_0 = arith.constant 0 : i32
    %2 = arith.cmpi ne, %1, %c0_i32_0 : i32
    scf.if %2 {
      %cst_10 = arith.constant 0.000000e+00 : f32
      %15 = vector.broadcast %cst_10 : f32 to vector<8x128xf32>
      %c0_11 = arith.constant 0 : index
      %c0_12 = arith.constant 0 : index
      %16 = vector.load %arg5[%c0_11, %c0_12] : memref<8x128xf32, #tpu.memory_space<vmem>>, vector<8x128xf32>
      tpu.vector_store %arg5[%c0_11, %c0_12], %15 {strides = array<i32>} : memref<8x128xf32, #tpu.memory_space<vmem>>, vector<8x128xf32>,
    } else {
    }
    %c0 = arith.constant 0 : index
    %c0_1 = arith.constant 0 : index
    %3 = vector.load %arg2[%c0, %c0_1] : memref<16x128xf32, #tpu.memory_space<vmem>>, vector<16x128xf32>
    %c0_2 = arith.constant 0 : index
    %c0_3 = arith.constant 0 : index
    %4 = vector.load %arg3[%c0_2, %c0_3] : memref<16x128xf32, #tpu.memory_space<vmem>>, vector<16x128xf32>
    %5 = arith.subf %3, %4 : vector<16x128xf32>
    %6 = math.absf %5 : vector<16x128xf32>
    %c0_4 = arith.constant 0 : index
    %c0_5 = arith.constant 0 : index
    %7 = vector.load %arg5[%c0_4, %c0_5] : memref<8x128xf32, #tpu.memory_space<vmem>>, vector<8x128xf32>
    %8 = vector.shape_cast %6 : vector<16x128xf32> to vector<2x8x128xf32>
    %cst = arith.constant dense<0.000000e+00> : vector<8x128xf32>
    %9 = vector.multi_reduction <add>, %8, %cst [0] : vector<2x8x128xf32> to vector<8x128xf32>
    %10 = arith.addf %7, %9 : vector<8x128xf32>
    %c0_6 = arith.constant 0 : index
    %c0_7 = arith.constant 0 : index
    %11 = vector.load %arg5[%c0_6, %c0_7] : memref<8x128xf32, #tpu.memory_space<vmem>>, vector<8x128xf32>
    tpu.vector_store %arg5[%c0_6, %c0_7], %10 {strides = array<i32>} : memref<8x128xf32, #tpu.memory_space<vmem>>, vector<8x128xf32>,
    %c0_i32_8 = arith.constant 0 : i32
    %12 = arith.cmpi eq, %arg1, %c0_i32_8 : i32
    %13 = arith.extui %12 : i1 to i32
    %c0_i32_9 = arith.constant 0 : i32
    %14 = arith.cmpi ne, %13, %c0_i32_9 : i32
    scf.if %14 {
      %c0_10 = arith.constant 0 : index
      %c0_11 = arith.constant 0 : index
      %15 = vector.load %arg5[%c0_10, %c0_11] : memref<8x128xf32, #tpu.memory_space<vmem>>, vector<8x128xf32>
      %16 = vector.shape_cast %15 : vector<8x128xf32> to vector<1x8x128xf32>
      %cst_12 = arith.constant dense<0.000000e+00> : vector<1xf32>
      %17 = vector.multi_reduction <add>, %16, %cst_12 [1, 2] : vector<1x8x128xf32> to vector<1xf32>
      %18 = vector.shape_cast %17 : vector<1xf32> to vector<1x1x1xf32>
      %19 = vector.extract %18[0, 0, 0] : f32 from vector<1x1x1xf32>
      %c0_13 = arith.constant 0 : index
      %c0_14 = arith.constant 0 : index
      %20 = memref.load %arg4[%c0_13, %c0_14] : memref<1x1xf32, #tpu.memory_space<smem>>
      memref.store %19, %arg4[%c0_13, %c0_14] : memref<1x1xf32, #tpu.memory_space<smem>>
    } else {
    }
    return
  }
  func.func @transform_0(%arg0: i32, %arg1: i32) -> (i32, i32) {
    %c1_i32 = arith.constant 1 : i32
    %0 = arith.muli %arg0, %c1_i32 : i32
    %1 = arith.addi %0, %arg1 : i32
    %c0_i32 = arith.constant 0 : i32
    %c0_i32_0 = arith.constant 0 : i32
    return %1, %c0_i32 : i32, i32
  }
  func.func @transform_1(%arg0: i32, %arg1: i32) -> (i32, i32) {
    %c1_i32 = arith.constant 1 : i32
    %0 = arith.muli %arg0, %c1_i32 : i32
    %1 = arith.addi %0, %arg1 : i32
    %c0_i32 = arith.constant 0 : i32
    %c0_i32_0 = arith.constant 0 : i32
    return %1, %c0_i32 : i32, i32
  }
  func.func @transform_2(%arg0: i32, %arg1: i32) -> (i32, i32) {
    %c0_i32 = arith.constant 0 : i32
    %c0_i32_0 = arith.constant 0 : i32
    return %arg0, %c0_i32 : i32, i32
  }
}

</mosaic_0001>

<bundles_post_ra>
// kernel: tpu_custom_call.1
= control target key start
LH: loop header
LB: loop body
LE: loop exit
PB: predicated region body
PF: predicated region fallthrough
CT: control target
= control target key end

     0   :  { %7 = vsyncpa [#allocation4], 0  ;;  %s222_s0 = inlined_call_operand.hbm [shape: f32[16,128], index: 0, kind: input, shape index: {}]   ;;  %s223_s1 = inlined_call_operand.hbm [shape: f32[16,128], index: 1, kind: input, shape index: {}]   ;;  %s224_s2 = inlined_call_operand.hbm [shape: f32[1,1], index: 2, kind: output, shape index: {}]  }
   0x1   :  { %8 = vsyncpa [#allocation7], 0 }
   0x2   :  { %9 = vsyncpa [#allocation5], 0  ;;  %s166_s9 = smov [#allocation3]   ;;  %s106_s13 = scalar_lea.hbm %s222_s0, 256 }
   0x3   :  { %s19_s10 = sshll.u32 %s166_s9, 4  ;;  %p107_p0 = scmp.ne.s32.totalorder %s222_s0, %s106_s13  ;;  %s20_s10 = int_to_ptr.vmem [resolvable:$true] %s19_s10 }
   0x4   :  { %p110_p1 = scmp.lt.u32.totalorder %s106_s13, %s222_s0 }
   0x6   :  { %p112_p2 = pnand %p110_p1, %p107_p0 }
   0x8   :  { %115 = shalt.err (!%p112_p2)
}
   0x9   :  { %s116_s18 = scalar_lea.vmem %s20_s10, 256  ;;  %p121_p4 = scmp.lt.s32.totalorder %s20_s10, %s20_s10 }
   0xa   :  { %p117_p3 = scmp.ne.s32.totalorder %s20_s10, %s116_s18  ;;  %p122_p5 = scmp.lt.s32.totalorder %s116_s18, %s116_s18 }
   0xc   :  { %p123_p6 = por %p122_p5, %p121_p4 }
   0xe   :  { %p124_p7 = pnand %p123_p6, %p117_p3 }
  0x10   :  { %127 = shalt.err (!%p124_p7)
}
  0x11   :  { %s167_s19 = smov 128   ;;  %s168_s20 = smov 8  }
  0x12   :  { %25 = dma.hbm_to_vmem [thread:$0]  %s222_s0, 256, %s20_s10, [#allocation4], %s167_s19, %s167_s19, %s168_s20  }
  0x13   :  { %s169_s23 = smov [#allocation6]   ;;  %s128_s27 = scalar_lea.hbm %s223_s1, 256 }
  0x14   :  { %s35_s24 = sshll.u32 %s169_s23, 4  ;;  %p129_p8 = scmp.ne.s32.totalorder %s223_s1, %s128_s27  ;;  %s36_s24 = int_to_ptr.vmem [resolvable:$true] %s35_s24 }
  0x15   :  { %p132_p9 = scmp.lt.u32.totalorder %s128_s27, %s223_s1 }
  0x17   :  { %p134_p10 = pnand %p132_p9, %p129_p8 }
  0x19   :  { %137 = shalt.err (!%p134_p10)
}
  0x1a   :  { %s138_s4 = scalar_lea.vmem %s36_s24, 256  ;;  %p143_p12 = scmp.lt.s32.totalorder %s36_s24, %s36_s24 }
  0x1b   :  { %p139_p11 = scmp.ne.s32.totalorder %s36_s24, %s138_s4  ;;  %p144_p13 = scmp.lt.s32.totalorder %s138_s4, %s138_s4 }
  0x1d   :  { %p145_p0 = por %p144_p13, %p143_p12 }
  0x1f   :  { %p146_p1 = pnand %p145_p0, %p139_p11 }
  0x21   :  { %149 = shalt.err (!%p146_p1)
}
  0x22   :  { %41 = dma.hbm_to_vmem [thread:$0]  %s223_s1, 256, %s36_s24, [#allocation7], %s167_s19, %s167_s19, %s168_s20  }
  0x23   :  { %160 = dma.done.wait [#allocation4], 256  }
  0x24   :  { %161 = vsyncadd [#allocation4], 4294967040 }
  0x25   :  { %162 = dma.done.wait [#allocation7], 256  }
  0x26   :  { %163 = vsyncadd [#allocation7], 4294967040  ;;  %v57_v0 = vld [vmem:[#allocation3] sm:$0xff]  ;;  %v58_v1 = vld [vmem:[#allocation3 + $0x8] sm:$0xff]  ;;  %s150_s8 = scalar_lea.hbm %s224_s2, 16 }
  0x27   :  { %v59_v2 = vld [vmem:[#allocation6] sm:$0xff]  ;;  %v60_v3 = vld [vmem:[#allocation6 + $0x8] sm:$0xff]  ;;  %p151_p2 = scmp.ne.s32.totalorder %s224_s2, %s150_s8  ;;  %p154_p3 = scmp.lt.u32.totalorder %s150_s8, %s224_s2 }
  0x28   :  { %v61_v4 = vsub.f32 %v57_v0, %v59_v2  ;;  %v62_v5 = vsub.f32 %v58_v1, %v60_v3 }
  0x29   :  { %p156_p4 = pnand %p154_p3, %p151_p2 }
  0x2a   :  { %v63_v6 = vand.u32 2147483647, %v61_v4  ;;  %v64_v7 = vand.u32 2147483647, %v62_v5 }
  0x2c   :  { %v66_v8 = vadd.f32 %v64_v7, %v63_v6 }
  0x2e   :  { %73 = vadd.xlane.f32.xlu0 %v66_v8 }
  0xbb   :  { %v74_v9 = vpop.xlane.xlu0 %73 }
  0xbc   :  { %v75_v10 = vrot.slane %v74_v9, 4 }
  0xbe   :  { %v76_v11 = vadd.f32 %v75_v10, %v74_v9 }
  0xc0   :  { %v77_v12 = vrot.slane %v76_v11, 2 }
  0xc2   :  { %v78_v13 = vadd.f32 %v77_v12, %v76_v11 }
  0xc4   :  { %v79_v14 = vrot.slane %v78_v13, 1 }
  0xc6   :  { %v80_v15 = vadd.f32 %v79_v14, %v78_v13 }
  0xc8   :  { %99 = vpush %v80_v15 }
  0xf9   :  { %s100_s1 = spop %99 }
  0xfa   :  { %83 = sst [smem:[#allocation8]] %s100_s1 }
  0xfb   :  { %159 = shalt.err (!%p156_p4)
}
  0xfc   :  { %s170_s13 = smov [#allocation8]  }
  0xfd   :  { %91 = dma.smem_to_hbm %s170_s13, 16, %s224_s2, [#allocation5]  }
  0xfe   :  { %164 = dma.done.wait [#allocation5], 16  }
  0xff   :  { %165 = vsyncadd [#allocation5], 4294967280 }
 0x100   :  { %95 = sfence }
 0x101   :  { %96 = vsyncpa [#allocation4], 1 }
 0x102   :  { %97 = vsyncpa [#allocation7], 1 }
 0x103   :  { %98 = vsyncpa [#allocation5], 1 }

</bundles_post_ra>
